<compile_context>
chip_gen: v6e
topology: v6e:2x2x1
jax: 0.10.0
libtpu: 0.0.40
codegen_flags: <defaults>
</compile_context>

<pallas_src>
import functools

import jax
import jax.numpy as jnp
from jax.experimental import pallas as pl
from jax.experimental.pallas import tpu as pltpu


def _leaky_relu(x, slope=0.01):
    # F.leaky_relu default negative_slope = 0.01
    return jnp.where(x > 0, x, slope * x)


def _round_up(n, m):
    return ((n + m - 1) // m) * m


# ----------------------------------------------------------------------------- kernels

def actor_pc_kernel_fused(obs_ref,
                          w1_ref, b1_ref, w2_ref, b2_ref,
                          wf1_ref, bf1_ref, wf2_ref, bf2_ref, wf3_ref, bf3_ref,
                          out_ref):
    f32, bf16 = jnp.float32, jnp.bfloat16
    x = obs_ref[...].astype(bf16)
    # fused branch layer 1: (rsd+emb) -> 256   (block-diag robot_fc1 | obj_fc1)
    h = _leaky_relu(jnp.dot(x, w1_ref[...], preferred_element_type=f32) + b1_ref[...])
    # fused branch layer 2: 256 -> 256         (block-diag robot_fc2 | obj_fc2)
    h = _leaky_relu(jnp.dot(h.astype(bf16), w2_ref[...], preferred_element_type=f32) + b2_ref[...])
    # head: 256 -> 128 -> 128(=64 padded) -> out_pad
    h = _leaky_relu(jnp.dot(h.astype(bf16), wf1_ref[...], preferred_element_type=f32) + bf1_ref[...])
    h = _leaky_relu(jnp.dot(h.astype(bf16), wf2_ref[...], preferred_element_type=f32) + bf2_ref[...])
    y = jnp.dot(h.astype(bf16), wf3_ref[...], preferred_element_type=f32) + bf3_ref[...]
    out_ref[...] = y.astype(out_ref.dtype)


def actor_pc_kernel_split(obs_ref,
                          w1_ref, b1_ref, w2r_ref, w2o_ref, b2_ref,
                          wf1_ref, bf1_ref, wf2_ref, bf2_ref, wf3_ref, bf3_ref,
                          out_ref):
    """Same network, but robot_fc2 / obj_fc2 as two 128x128 matmuls (v5e MXU granule)."""
    f32, bf16 = jnp.float32, jnp.bfloat16
    x = obs_ref[...].astype(bf16)
    h = _leaky_relu(jnp.dot(x, w1_ref[...], preferred_element_type=f32) + b1_ref[...])
    hb = h.astype(bf16)
    hr = jnp.dot(hb[:, :128], w2r_ref[...], preferred_element_type=f32)
    ho = jnp.dot(hb[:, 128:], w2o_ref[...], preferred_element_type=f32)
    h = _leaky_relu(jnp.concatenate([hr, ho], axis=-1) + b2_ref[...])
    h = _leaky_relu(jnp.dot(h.astype(bf16), wf1_ref[...], preferred_element_type=f32) + bf1_ref[...])
    h = _leaky_relu(jnp.dot(h.astype(bf16), wf2_ref[...], preferred_element_type=f32) + bf2_ref[...])
    y = jnp.dot(h.astype(bf16), wf3_ref[...], preferred_element_type=f32) + bf3_ref[...]
    out_ref[...] = y.astype(out_ref.dtype)


# --------------------------------------------------------------------- one-time packing

def pack_params(params, robot_state_dim, *, split_w2=False):
    """Pack/cast ActorPC weights once (at model load), NOT per forward call.

    - W1 fuses robot_fc1 | obj_fc1 block-diagonally: (rsd+emb, 256).
    - W2 fused block-diag (256,256) OR split into two (128,128) blocks (v5e).
    - fc2 output lane-padded 64->128 (zero columns), fc3 padded to (128, out_pad)
      so every intermediate / the output tile is full-lane (128 multiple).
    - matmul operands cast to bf16, biases stay f32.
    """
    rsd = robot_state_dim
    emb = params["w_o1"].shape[0]
    feat = rsd + emb
    act_dim = params["w_f3"].shape[1]
    out_pad = _round_up(max(act_dim, 1), 128)   # guards act_dim > 128 (no silent truncation)
    f32, bf16 = jnp.float32, jnp.bfloat16

    # W1: cols 0:128 = robot_fc1 (rows 0:rsd), cols 128:256 = obj_fc1 (rows rsd:)
    w1 = jnp.zeros((feat, 256), f32)
    w1 = w1.at[:rsd, :128].set(params["w_r1"])
    w1 = w1.at[rsd:, 128:].set(params["w_o1"])
    b1 = jnp.concatenate([params["b_r1"], params["b_o1"]], axis=-1)

    b2 = jnp.concatenate([params["b_r2"], params["b_o2"]], axis=-1)

    # fc2 lane-padded to (128, 128): output columns 64:128 are zero.
    wf2 = jnp.zeros((128, 128), f32).at[:, :64].set(params["w_f2"])
    bf2 = jnp.zeros((1, 128), f32).at[:, :64].set(params["b_f2"])
    # fc3 padded: rows 64:128 zero (match padded fc2), columns padded to out_pad.
    wf3 = jnp.zeros((128, out_pad), f32).at[:64, :act_dim].set(params["w_f3"])
    bf3 = jnp.zeros((1, out_pad), f32).at[:, :act_dim].set(params["b_f3"])

    head = (params["w_f1"].astype(bf16), params["b_f1"].astype(f32),
            wf2.astype(bf16), bf2.astype(f32),
            wf3.astype(bf16), bf3.astype(f32))

    if split_w2:
        return (w1.astype(bf16), b1.astype(f32),
                params["w_r2"].astype(bf16), params["w_o2"].astype(bf16),
                b2.astype(f32)) + head

    w2 = jnp.zeros((256, 256), f32)
    w2 = w2.at[:128, :128].set(params["w_r2"])
    w2 = w2.at[128:, 128:].set(params["w_o2"])
    return (w1.astype(bf16), b1.astype(f32),
            w2.astype(bf16), b2.astype(f32)) + head


def _default_split_w2():
    """v5e's MXU granule is 128x128 -> split W2 there; v6e/v7x (256x256) keep it fused."""
    try:
        kind = jax.devices()[0].device_kind.lower()
    except Exception:
        return False
    return ("v5" in kind) and ("lite" in kind or "v5e" in kind)


def _pick_batch_tile(B, block_b):
    """Rows per grid step: multiple of 8 (or == full batch).  For large batches keep
    >= 2 grid steps so the "parallel" axis feeds both v7x TensorCores."""
    if B <= block_b:
        if B > 512 and B % 16 == 0:
            return B // 2           # 2 grid steps, exact split, sublane-aligned
        return B                    # single step; block == full dim is always legal
    tb = min(block_b, _round_up(pl.cdiv(B, 2), 8))
    return max(8, (tb // 8) * 8)    # ragged tail handled by masked edge stores


# ------------------------------------------------------------------------------- forward

@functools.partial(jax.jit, static_argnames=("act_dim", "split_w2", "block_b"))
def actor_pc_forward(obs, packed, *, act_dim, split_w2=False, block_b=2048):
    """Pallas-backed equivalent of ActorPC.forward(obs) using pre-packed weights."""
    B, feat = obs.shape
    obs = obs.astype(jnp.float32)

    wf3 = packed[-2]
    out_pad = wf3.shape[1]

    tb = _pick_batch_tile(B, block_b)
    grid = (pl.cdiv(B, tb),)

    kernel = actor_pc_kernel_split if split_w2 else actor_pc_kernel_fused

    # Weights/biases: constant index_map -> resident in VMEM across all grid steps.
    weight_specs = [pl.BlockSpec(w.shape, lambda i: (0, 0)) for w in packed]

    w2_flops = 2 * 128 * 128 if split_w2 else 256 * 256
    flops_per_row = 2 * (feat * 256 + w2_flops + 256 * 128 + 128 * 128 + 128 * out_pad)
    weight_bytes = sum(int(w.nbytes) for w in packed)
    cost = pl.CostEstimate(
        flops=flops_per_row * B,
        transcendentals=0,
        bytes_accessed=B * feat * 4 + B * out_pad * 2 + weight_bytes,
    )

    # Explicit VMEM limit only when the estimate exceeds the smallest default scoped
    # limit (16 MiB on v5e); cap under v7x's 64 MiB physical VMEM.
    per_row_vmem = feat * 4 * 2 + out_pad * 2 * 2 + 256 * 4 * 4
    vmem_est = tb * per_row_vmem + weight_bytes + (2 << 20)
    cp_kwargs = dict(dimension_semantics=("parallel",))
    if vmem_est > (16 << 20):
        cp_kwargs["vmem_limit_bytes"] = int(min(vmem_est + (8 << 20), 56 << 20))

    out = pl.pallas_call(
        kernel,
        out_shape=jax.ShapeDtypeStruct((B, out_pad), jnp.bfloat16),
        grid_spec=pltpu.PrefetchScalarGridSpec(
            num_scalar_prefetch=0,
            grid=grid,
            in_specs=[pl.BlockSpec((tb, feat), lambda i: (i, 0))] + weight_specs,
            out_specs=pl.BlockSpec((tb, out_pad), lambda i: (i, 0)),
        ),
        compiler_params=pltpu.CompilerParams(**cp_kwargs),
        cost_estimate=cost,
    )(obs, *packed)

    return out[:, :act_dim].astype(jnp.float32)


# ---------------------------------------------------------------------------- references

def init_params(key, act_dim, robot_state_dim, emb_dim, initial_std=0.1):
    """Deterministic synthetic parameter init (shapes match ActorPC.__init__)."""
    layer_dims = {
        "o1": (emb_dim, 128),
        "o2": (128, 128),
        "r1": (robot_state_dim, 128),
        "r2": (128, 128),
        "f1": (256, 128),
        "f2": (128, 64),
        "f3": (64, act_dim),
    }
    params = {}
    keys = jax.random.split(key, 2 * len(layer_dims))
    for i, (name, (din, dout)) in enumerate(layer_dims.items()):
        kw, kb = keys[2 * i], keys[2 * i + 1]
        params[f"w_{name}"] = jax.random.normal(kw, (din, dout), jnp.float32) * 0.05
        params[f"b_{name}"] = jax.random.normal(kb, (1, dout), jnp.float32) * 0.05
    # log_std exists in the module but is unused in forward(); kept for parity.
    params["log_std"] = jnp.log(initial_std) * jnp.ones((act_dim,), jnp.float32)
    return params


def reference_forward(obs, params, robot_state_dim):
    """Pure-JAX f32 reference mirroring the PyTorch forward."""
    robot_state = obs[:, :robot_state_dim]
    obj_emb = obs[:, robot_state_dim:]
    obj = _leaky_relu(obj_emb @ params["w_o1"] + params["b_o1"])
    obj = _leaky_relu(obj @ params["w_o2"] + params["b_o2"])
    rob = _leaky_relu(robot_state @ params["w_r1"] + params["b_r1"])
    rob = _leaky_relu(rob @ params["w_r2"] + params["b_r2"])
    x = jnp.concatenate([rob, obj], axis=-1)
    x = _leaky_relu(x @ params["w_f1"] + params["b_f1"])
    x = _leaky_relu(x @ params["w_f2"] + params["b_f2"])
    return x @ params["w_f3"] + params["b_f3"]


def _dot_bf16(a, w):
    return jnp.dot(a.astype(jnp.bfloat16), w.astype(jnp.bfloat16),
                   preferred_element_type=jnp.float32)


def reference_forward_bf16(obs, params, robot_state_dim):
    """Reference emulating the kernel: bf16 matmul operands, f32 accumulate/bias/act,
    final result rounded to bf16 (matches the kernel's bf16 output)."""
    robot_state = obs[:, :robot_state_dim]
    obj_emb = obs[:, robot_state_dim:]
    obj = _leaky_relu(_dot_bf16(obj_emb, params["w_o1"]) + params["b_o1"])
    obj = _leaky_relu(_dot_bf16(obj, params["w_o2"]) + params["b_o2"])
    rob = _leaky_relu(_dot_bf16(robot_state, params["w_r1"]) + params["b_r1"])
    rob = _leaky_relu(_dot_bf16(rob, params["w_r2"]) + params["b_r2"])
    x = jnp.concatenate([rob, obj], axis=-1)
    x = _leaky_relu(_dot_bf16(x, params["w_f1"]) + params["b_f1"])
    x = _leaky_relu(_dot_bf16(x, params["w_f2"]) + params["b_f2"])
    y = _dot_bf16(x, params["w_f3"]) + params["b_f3"]
    return y.astype(jnp.bfloat16).astype(jnp.float32)


if __name__ == "__main__":
    # Small shapes consistent with the module's forward.
    B = 8
    act_dim = 3
    robot_state_dim = 8
    emb_dim = 32
    initial_std = 0.1

    key = jax.random.PRNGKey(0)
    k_obs, k_params = jax.random.split(key)
    obs = jax.random.normal(k_obs, (B, robot_state_dim + emb_dim), jnp.float32)
    params = init_params(k_params, act_dim, robot_state_dim, emb_dim, initial_std)

    ref_f32 = reference_forward(obs, params, robot_state_dim)
    ref_bf16 = reference_forward_bf16(obs, params, robot_state_dim)

    default_split = _default_split_w2()
    # The generation-appropriate variant is chosen by default (split W2 on v5e,
    # fused on v6e/v7x); exercise both variants here for coverage.
    for split_w2 in (default_split, not default_split):
        packed = pack_params(params, robot_state_dim, split_w2=split_w2)  # one-time pack
        action_mean = actor_pc_forward(obs, packed, act_dim=act_dim, split_w2=split_w2)
        action_mean = jax.block_until_ready(action_mean)

        assert action_mean.shape == (B, act_dim)
        # Tight check vs. a reference that emulates bf16 operands + bf16 output rounding.
        assert jnp.allclose(action_mean, ref_bf16, atol=2e-3, rtol=1e-2), \
            f"mismatch vs bf16-emulated reference (split_w2={split_w2})"
        # Semantic check vs. the pure-f32 PyTorch-equivalent forward (bf16 rounding slack).
        assert jnp.allclose(action_mean, ref_f32, atol=2e-2, rtol=5e-2), \
            f"mismatch vs f32 reference (split_w2={split_w2})"

    # TODO(synk): ActorPC.act() samples from a MultivariateNormal built from log_std;
    # stochastic sampling is left outside the kernel (forward/action_mean semantics only).
    print("KERNEL_OK")
</pallas_src>

<mosaic_0001>
module attributes {stable_mosaic.version = 11 : i64} {
  func.func @actor_pc_kernel_fused(%arg0: i32, %arg1: memref<8x40xf32, #tpu.memory_space<vmem>>, %arg2: memref<40x256xbf16, #tpu.memory_space<vmem>>, %arg3: memref<1x256xf32, #tpu.memory_space<vmem>>, %arg4: memref<256x256xbf16, #tpu.memory_space<vmem>>, %arg5: memref<1x256xf32, #tpu.memory_space<vmem>>, %arg6: memref<256x128xbf16, #tpu.memory_space<vmem>>, %arg7: memref<1x128xf32, #tpu.memory_space<vmem>>, %arg8: memref<128x128xbf16, #tpu.memory_space<vmem>>, %arg9: memref<1x128xf32, #tpu.memory_space<vmem>>, %arg10: memref<128x128xbf16, #tpu.memory_space<vmem>>, %arg11: memref<1x128xf32, #tpu.memory_space<vmem>>, %arg12: memref<8x128xbf16, #tpu.memory_space<vmem>>) attributes {dimension_semantics = [#tpu.dimension_semantics<parallel>], iteration_bounds = array<i64: 1>, scalar_prefetch = 0 : i64, scratch_operands = 0 : i64, tpu.core_type = #tpu.core_type<tc>, window_params = [{transform_indices = @transform_0, window_bounds = array<i64: 8, 40>}, {pipeline_mode = #tpu.pipeline_mode<synchronous>, transform_indices = @transform_1, window_bounds = array<i64: 40, 256>}, {pipeline_mode = #tpu.pipeline_mode<synchronous>, transform_indices = @transform_2, window_bounds = array<i64: 1, 256>}, {pipeline_mode = #tpu.pipeline_mode<synchronous>, transform_indices = @transform_3, window_bounds = array<i64: 256, 256>}, {pipeline_mode = #tpu.pipeline_mode<synchronous>, transform_indices = @transform_4, window_bounds = array<i64: 1, 256>}, {pipeline_mode = #tpu.pipeline_mode<synchronous>, transform_indices = @transform_5, window_bounds = array<i64: 256, 128>}, {pipeline_mode = #tpu.pipeline_mode<synchronous>, transform_indices = @transform_6, window_bounds = array<i64: 1, 128>}, {pipeline_mode = #tpu.pipeline_mode<synchronous>, transform_indices = @transform_7, window_bounds = array<i64: 128, 128>}, {pipeline_mode = #tpu.pipeline_mode<synchronous>, transform_indices = @transform_8, window_bounds = array<i64: 1, 128>}, {pipeline_mode = #tpu.pipeline_mode<synchronous>, transform_indices = @transform_9, window_bounds = array<i64: 128, 128>}, {pipeline_mode = #tpu.pipeline_mode<synchronous>, transform_indices = @transform_10, window_bounds = array<i64: 1, 128>}, {transform_indices = @transform_11, window_bounds = array<i64: 8, 128>}]} {
    %c0 = arith.constant 0 : index
    %c0_0 = arith.constant 0 : index
    %0 = vector.load %arg1[%c0, %c0_0] : memref<8x40xf32, #tpu.memory_space<vmem>>, vector<8x40xf32>
    %1 = arith.truncf %0 : vector<8x40xf32> to vector<8x40xbf16>
    %c0_1 = arith.constant 0 : index
    %c0_2 = arith.constant 0 : index
    %2 = vector.load %arg2[%c0_1, %c0_2] : memref<40x256xbf16, #tpu.memory_space<vmem>>, vector<40x256xbf16>
    %cst = arith.constant dense<0.000000e+00> : vector<8x256xf32>
    %3 = tpu.matmul %1, %2, %cst {dimension_numbers = #tpu.dot_dimension_numbers<[1], [0], [0], [1], [0, 0, 1, 1], [], []>} : vector<8x40xbf16>, vector<40x256xbf16>, vector<8x256xf32> -> vector<8x256xf32>
    %c0_3 = arith.constant 0 : index
    %c0_4 = arith.constant 0 : index
    %4 = vector.load %arg3[%c0_3, %c0_4] : memref<1x256xf32, #tpu.memory_space<vmem>>, vector<1x256xf32>
    %5 = vector.broadcast %4 : vector<1x256xf32> to vector<8x256xf32>
    %6 = arith.addf %3, %5 : vector<8x256xf32>
    %cst_5 = arith.constant 0.000000e+00 : f32
    %7 = vector.broadcast %cst_5 : f32 to vector<8x256xf32>
    %8 = arith.cmpf ogt, %6, %7 : vector<8x256xf32>
    %cst_6 = arith.constant 0.00999999977 : f32
    %9 = vector.broadcast %cst_6 : f32 to vector<8x256xf32>
    %10 = arith.mulf %9, %6 : vector<8x256xf32>
    %11 = arith.select %8, %6, %10 : vector<8x256xi1>, vector<8x256xf32>
    %12 = arith.truncf %11 : vector<8x256xf32> to vector<8x256xbf16>
    %c0_7 = arith.constant 0 : index
    %c0_8 = arith.constant 0 : index
    %13 = vector.load %arg4[%c0_7, %c0_8] : memref<256x256xbf16, #tpu.memory_space<vmem>>, vector<256x256xbf16>
    %cst_9 = arith.constant dense<0.000000e+00> : vector<8x256xf32>
    %14 = tpu.matmul %12, %13, %cst_9 {dimension_numbers = #tpu.dot_dimension_numbers<[1], [0], [0], [1], [0, 0, 1, 1], [], []>} : vector<8x256xbf16>, vector<256x256xbf16>, vector<8x256xf32> -> vector<8x256xf32>
    %c0_10 = arith.constant 0 : index
    %c0_11 = arith.constant 0 : index
    %15 = vector.load %arg5[%c0_10, %c0_11] : memref<1x256xf32, #tpu.memory_space<vmem>>, vector<1x256xf32>
    %16 = vector.broadcast %15 : vector<1x256xf32> to vector<8x256xf32>
    %17 = arith.addf %14, %16 : vector<8x256xf32>
    %cst_12 = arith.constant 0.000000e+00 : f32
    %18 = vector.broadcast %cst_12 : f32 to vector<8x256xf32>
    %19 = arith.cmpf ogt, %17, %18 : vector<8x256xf32>
    %cst_13 = arith.constant 0.00999999977 : f32
    %20 = vector.broadcast %cst_13 : f32 to vector<8x256xf32>
    %21 = arith.mulf %20, %17 : vector<8x256xf32>
    %22 = arith.select %19, %17, %21 : vector<8x256xi1>, vector<8x256xf32>
    %23 = arith.truncf %22 : vector<8x256xf32> to vector<8x256xbf16>
    %c0_14 = arith.constant 0 : index
    %c0_15 = arith.constant 0 : index
    %24 = vector.load %arg6[%c0_14, %c0_15] : memref<256x128xbf16, #tpu.memory_space<vmem>>, vector<256x128xbf16>
    %cst_16 = arith.constant dense<0.000000e+00> : vector<8x128xf32>
    %25 = tpu.matmul %23, %24, %cst_16 {dimension_numbers = #tpu.dot_dimension_numbers<[1], [0], [0], [1], [0, 0, 1, 1], [], []>} : vector<8x256xbf16>, vector<256x128xbf16>, vector<8x128xf32> -> vector<8x128xf32>
    %c0_17 = arith.constant 0 : index
    %c0_18 = arith.constant 0 : index
    %26 = vector.load %arg7[%c0_17, %c0_18] : memref<1x128xf32, #tpu.memory_space<vmem>>, vector<1x128xf32>
    %27 = vector.broadcast %26 : vector<1x128xf32> to vector<8x128xf32>
    %28 = arith.addf %25, %27 : vector<8x128xf32>
    %cst_19 = arith.constant 0.000000e+00 : f32
    %29 = vector.broadcast %cst_19 : f32 to vector<8x128xf32>
    %30 = arith.cmpf ogt, %28, %29 : vector<8x128xf32>
    %cst_20 = arith.constant 0.00999999977 : f32
    %31 = vector.broadcast %cst_20 : f32 to vector<8x128xf32>
    %32 = arith.mulf %31, %28 : vector<8x128xf32>
    %33 = arith.select %30, %28, %32 : vector<8x128xi1>, vector<8x128xf32>
    %34 = arith.truncf %33 : vector<8x128xf32> to vector<8x128xbf16>
    %c0_21 = arith.constant 0 : index
    %c0_22 = arith.constant 0 : index
    %35 = vector.load %arg8[%c0_21, %c0_22] : memref<128x128xbf16, #tpu.memory_space<vmem>>, vector<128x128xbf16>
    %cst_23 = arith.constant dense<0.000000e+00> : vector<8x128xf32>
    %36 = tpu.matmul %34, %35, %cst_23 {dimension_numbers = #tpu.dot_dimension_numbers<[1], [0], [0], [1], [0, 0, 1, 1], [], []>} : vector<8x128xbf16>, vector<128x128xbf16>, vector<8x128xf32> -> vector<8x128xf32>
    %c0_24 = arith.constant 0 : index
    %c0_25 = arith.constant 0 : index
    %37 = vector.load %arg9[%c0_24, %c0_25] : memref<1x128xf32, #tpu.memory_space<vmem>>, vector<1x128xf32>
    %38 = vector.broadcast %37 : vector<1x128xf32> to vector<8x128xf32>
    %39 = arith.addf %36, %38 : vector<8x128xf32>
    %cst_26 = arith.constant 0.000000e+00 : f32
    %40 = vector.broadcast %cst_26 : f32 to vector<8x128xf32>
    %41 = arith.cmpf ogt, %39, %40 : vector<8x128xf32>
    %cst_27 = arith.constant 0.00999999977 : f32
    %42 = vector.broadcast %cst_27 : f32 to vector<8x128xf32>
    %43 = arith.mulf %42, %39 : vector<8x128xf32>
    %44 = arith.select %41, %39, %43 : vector<8x128xi1>, vector<8x128xf32>
    %45 = arith.truncf %44 : vector<8x128xf32> to vector<8x128xbf16>
    %c0_28 = arith.constant 0 : index
    %c0_29 = arith.constant 0 : index
    %46 = vector.load %arg10[%c0_28, %c0_29] : memref<128x128xbf16, #tpu.memory_space<vmem>>, vector<128x128xbf16>
    %cst_30 = arith.constant dense<0.000000e+00> : vector<8x128xf32>
    %47 = tpu.matmul %45, %46, %cst_30 {dimension_numbers = #tpu.dot_dimension_numbers<[1], [0], [0], [1], [0, 0, 1, 1], [], []>} : vector<8x128xbf16>, vector<128x128xbf16>, vector<8x128xf32> -> vector<8x128xf32>
    %c0_31 = arith.constant 0 : index
    %c0_32 = arith.constant 0 : index
    %48 = vector.load %arg11[%c0_31, %c0_32] : memref<1x128xf32, #tpu.memory_space<vmem>>, vector<1x128xf32>
    %49 = vector.broadcast %48 : vector<1x128xf32> to vector<8x128xf32>
    %50 = arith.addf %47, %49 : vector<8x128xf32>
    %51 = arith.truncf %50 : vector<8x128xf32> to vector<8x128xbf16>
    %c0_33 = arith.constant 0 : index
    %c0_34 = arith.constant 0 : index
    %52 = vector.load %arg12[%c0_33, %c0_34] : memref<8x128xbf16, #tpu.memory_space<vmem>>, vector<8x128xbf16>
    tpu.vector_store %arg12[%c0_33, %c0_34], %51 {strides = array<i32>} : memref<8x128xbf16, #tpu.memory_space<vmem>>, vector<8x128xbf16>,
    return
  }
  func.func @transform_0(%arg0: i32) -> (i32, i32) {
    %c0_i32 = arith.constant 0 : i32
    %c0_i32_0 = arith.constant 0 : i32
    return %arg0, %c0_i32 : i32, i32
  }
  func.func @transform_1(%arg0: i32) -> (i32, i32) {
    %c0_i32 = arith.constant 0 : i32
    %c0_i32_0 = arith.constant 0 : i32
    %c0_i32_1 = arith.constant 0 : i32
    return %c0_i32, %c0_i32_0 : i32, i32
  }
  func.func @transform_2(%arg0: i32) -> (i32, i32) {
    %c0_i32 = arith.constant 0 : i32
    %c0_i32_0 = arith.constant 0 : i32
    %c0_i32_1 = arith.constant 0 : i32
    return %c0_i32, %c0_i32_0 : i32, i32
  }
  func.func @transform_3(%arg0: i32) -> (i32, i32) {
    %c0_i32 = arith.constant 0 : i32
    %c0_i32_0 = arith.constant 0 : i32
    %c0_i32_1 = arith.constant 0 : i32
    return %c0_i32, %c0_i32_0 : i32, i32
  }
  func.func @transform_4(%arg0: i32) -> (i32, i32) {
    %c0_i32 = arith.constant 0 : i32
    %c0_i32_0 = arith.constant 0 : i32
    %c0_i32_1 = arith.constant 0 : i32
    return %c0_i32, %c0_i32_0 : i32, i32
  }
  func.func @transform_5(%arg0: i32) -> (i32, i32) {
    %c0_i32 = arith.constant 0 : i32
    %c0_i32_0 = arith.constant 0 : i32
    %c0_i32_1 = arith.constant 0 : i32
    return %c0_i32, %c0_i32_0 : i32, i32
  }
  func.func @transform_6(%arg0: i32) -> (i32, i32) {
    %c0_i32 = arith.constant 0 : i32
    %c0_i32_0 = arith.constant 0 : i32
    %c0_i32_1 = arith.constant 0 : i32
    return %c0_i32, %c0_i32_0 : i32, i32
  }
  func.func @transform_7(%arg0: i32) -> (i32, i32) {
    %c0_i32 = arith.constant 0 : i32
    %c0_i32_0 = arith.constant 0 : i32
    %c0_i32_1 = arith.constant 0 : i32
    return %c0_i32, %c0_i32_0 : i32, i32
  }
  func.func @transform_8(%arg0: i32) -> (i32, i32) {
    %c0_i32 = arith.constant 0 : i32
    %c0_i32_0 = arith.constant 0 : i32
    %c0_i32_1 = arith.constant 0 : i32
    return %c0_i32, %c0_i32_0 : i32, i32
  }
  func.func @transform_9(%arg0: i32) -> (i32, i32) {
    %c0_i32 = arith.constant 0 : i32
    %c0_i32_0 = arith.constant 0 : i32
    %c0_i32_1 = arith.constant 0 : i32
    return %c0_i32, %c0_i32_0 : i32, i32
  }
  func.func @transform_10(%arg0: i32) -> (i32, i32) {
    %c0_i32 = arith.constant 0 : i32
    %c0_i32_0 = arith.constant 0 : i32
    %c0_i32_1 = arith.constant 0 : i32
    return %c0_i32, %c0_i32_0 : i32, i32
  }
  func.func @transform_11(%arg0: i32) -> (i32, i32) {
    %c0_i32 = arith.constant 0 : i32
    %c0_i32_0 = arith.constant 0 : i32
    return %arg0, %c0_i32 : i32, i32
  }
}

</mosaic_0001>

<bundles_post_ra>
// kernel: actor_pc_forward.1
= control target key start
LH: loop header
LB: loop body
LE: loop exit
PB: predicated region body
PF: predicated region fallthrough
CT: control target
= control target key end

     0   :  { %16 = vsyncpa [#allocation3], 0  ;;  %s1417_s0 = inlined_call_operand.hbm [shape: f32[8,40], index: 0, kind: input, shape index: {}]   ;;  %s1418_s1 = inlined_call_operand.hbm [shape: bf16[40,256], index: 1, kind: input, shape index: {}]   ;;  %s1419_s2 = inlined_call_operand.vmem [shape: f32[1,256], index: 2, kind: input, shape index: {}]   ;;  %s1420_s3 = inlined_call_operand.hbm [shape: bf16[256,256], index: 3, kind: input, shape index: {}]   ;;  %s1421_s4 = inlined_call_operand.vmem [shape: f32[1,256], index: 4, kind: input, shape index: {}]   ;;  %s1422_s5 = inlined_call_operand.hbm [shape: bf16[256,128], index: 5, kind: input, shape index: {}]   ;;  %s1423_s6 = inlined_call_operand.vmem [shape: f32[1,128], index: 6, kind: input, shape index: {}]   ;;  %s1424_s7 = inlined_call_operand.hbm [shape: bf16[128,128], index: 7, kind: input, shape index: {}]   ;;  %s1425_s8 = inlined_call_operand.vmem [shape: f32[1,128], index: 8, kind: input, shape index: {}]   ;;  %s1426_s9 = inlined_call_operand.hbm [shape: bf16[128,128], index: 9, kind: input, shape index: {}]   ;;  %s1427_s10 = inlined_call_operand.vmem [shape: f32[1,128], index: 10, kind: input, shape index: {}]   ;;  %s1428_s11 = inlined_call_operand.vmem [shape: bf16[8,128], index: 11, kind: output, shape index: {}]  }
   0x1   :  { %17 = vsyncpa [#allocation5], 0 }
   0x2   :  { %18 = vsyncpa [#allocation8], 0 }
   0x3   :  { %19 = vsyncpa [#allocation11], 0  ;;  %s1275_s17 = smov [#allocation4]  }
   0x4   :  { %s35_s18 = sshll.u32 %s1275_s17, 4  ;;  %s36_s18 = int_to_ptr.vmem [resolvable:$true] %s35_s18 }
   0x5   :  { %s1155_s19 = scalar_lea.vmem %s36_s18, 640  ;;  %p1160_p1 = scmp.lt.s32.totalorder %s36_s18, %s36_s18 }
   0x6   :  { %p1156_p0 = scmp.ne.s32.totalorder %s36_s18, %s1155_s19  ;;  %p1161_p2 = scmp.lt.s32.totalorder %s1155_s19, %s1155_s19 }
   0x8   :  { %p1162_p3 = por %p1161_p2, %p1160_p1 }
   0xa   :  { %p1163_p4 = pnand %p1162_p3, %p1156_p0 }
   0xc   :  { %1166 = shalt.err (!%p1163_p4)
}
   0xd   :  { %s1276_s20 = smov 128   ;;  %s1277_s21 = smov 8  }
   0xe   :  { %41 = dma.hbm_to_vmem [thread:$0]  %s1418_s1, 640, %s36_s18, [#allocation5], %s1276_s20, %s1276_s20, %s1277_s21  }
   0xf   :  { %s1278_s24 = smov [#allocation7]  }
  0x10   :  { %s63_s25 = sshll.u32 %s1278_s24, 4  ;;  %s64_s25 = int_to_ptr.vmem [resolvable:$true] %s63_s25 }
  0x11   :  { %s1175_s26 = scalar_lea.vmem %s64_s25, 2048  ;;  %p1180_p6 = scmp.lt.s32.totalorder %s64_s25, %s64_s25 }
  0x12   :  { %p1176_p5 = scmp.ne.s32.totalorder %s64_s25, %s1175_s26  ;;  %p1181_p7 = scmp.lt.s32.totalorder %s1175_s26, %s1175_s26 }
  0x14   :  { %p1182_p8 = por %p1181_p7, %p1180_p6 }
  0x16   :  { %p1183_p9 = pnand %p1182_p8, %p1176_p5 }
  0x18   :  { %1186 = shalt.err (!%p1183_p9)
}
  0x19   :  { %s1279_s27 = smov 64   ;;  %s1280_s28 = smov 4  }
  0x1a   :  { %69 = dma.hbm_to_vmem [thread:$0]  %s1422_s5, 2048, %s64_s25, [#allocation8], %s1279_s27, %s1279_s27, %s1280_s28  }
  0x1b   :  { %s1281_s1 = smov [#allocation2]   ;;  %s1282_s13 = smov [#allocation6]  }
  0x1c   :  { %s26_s12 = sshll.u32 %s1281_s1, 4  ;;  %s49_s14 = sshll.u32 %s1282_s13, 4  ;;  %s27_s12 = int_to_ptr.vmem [resolvable:$true] %s26_s12  ;;  %s50_s14 = int_to_ptr.vmem [resolvable:$true] %s49_s14 }
  0x1d   :  { %s1195_s15 = scalar_lea.vmem %s27_s12, 128  ;;  %p1200_p11 = scmp.lt.s32.totalorder %s27_s12, %s27_s12 }
  0x1e   :  { %p1196_p10 = scmp.ne.s32.totalorder %s27_s12, %s1195_s15  ;;  %p1201_p12 = scmp.lt.s32.totalorder %s1195_s15, %s1195_s15 }
  0x20   :  { %p1202_p13 = por %p1201_p12, %p1200_p11 }
  0x22   :  { %p1203_p0 = pnand %p1202_p13, %p1196_p10 }
  0x24   :  { %1206 = shalt.err (!%p1203_p0)
}
  0x25   :  { %29 = dma.hbm_to_vmem [thread:$0]  %s1417_s0, 128, %s27_s12, [#allocation3]  }
  0x26   :  { %s1215_s18 = scalar_lea.vmem %s50_s14, 4096  ;;  %p1220_p2 = scmp.lt.s32.totalorder %s50_s14, %s50_s14 }
  0x27   :  { %p1216_p1 = scmp.ne.s32.totalorder %s50_s14, %s1215_s18  ;;  %p1221_p3 = scmp.lt.s32.totalorder %s1215_s18, %s1215_s18 }
  0x29   :  { %p1222_p4 = por %p1221_p3, %p1220_p2 }
  0x2b   :  { %p1223_p5 = pnand %p1222_p4, %p1216_p1 }
  0x2d   :  { %1226 = shalt.err (!%p1223_p5)
}
  0x2e   :  { %55 = dma.hbm_to_vmem [thread:$0]  %s1420_s3, 4096, %s50_s14, [#allocation5], %s1276_s20, %s1276_s20, %s1277_s21  }
  0x2f   :  { %s1283_s22 = smov [#allocation9]   ;;  %s1284_s24 = smov [#allocation10]  }
  0x30   :  { %s77_s23 = sshll.u32 %s1283_s22, 4  ;;  %s91_s25 = sshll.u32 %s1284_s24, 4  ;;  %s78_s23 = int_to_ptr.vmem [resolvable:$true] %s77_s23  ;;  %s92_s25 = int_to_ptr.vmem [resolvable:$true] %s91_s25 }
  0x31   :  { %s1235_s0 = scalar_lea.vmem %s78_s23, 1024  ;;  %p1240_p7 = scmp.lt.s32.totalorder %s78_s23, %s78_s23 }
  0x32   :  { %p1236_p6 = scmp.ne.s32.totalorder %s78_s23, %s1235_s0  ;;  %p1241_p8 = scmp.lt.s32.totalorder %s1235_s0, %s1235_s0 }
  0x34   :  { %p1242_p9 = por %p1241_p8, %p1240_p7 }
  0x36   :  { %p1243_p10 = pnand %p1242_p9, %p1236_p6 }
  0x38   :  { %1246 = shalt.err (!%p1243_p10)
}
  0x39   :  { %83 = dma.hbm_to_vmem [thread:$0]  %s1424_s7, 1024, %s78_s23, [#allocation8], %s1279_s27, %s1279_s27, %s1280_s28  }
  0x3a   :  { %s1255_s3 = scalar_lea.vmem %s92_s25, 1024  ;;  %p1260_p12 = scmp.lt.s32.totalorder %s92_s25, %s92_s25 }
  0x3b   :  { %p1256_p11 = scmp.ne.s32.totalorder %s92_s25, %s1255_s3  ;;  %p1261_p13 = scmp.lt.s32.totalorder %s1255_s3, %s1255_s3 }
  0x3d   :  { %p1262_p0 = por %p1261_p13, %p1260_p12 }
  0x3f   :  { %p1263_p1 = pnand %p1262_p0, %p1256_p11 }
  0x41   :  { %1266 = shalt.err (!%p1263_p1)
}
  0x42   :  { %97 = dma.hbm_to_vmem [thread:$0]  %s1426_s9, 1024, %s92_s25, [#allocation11], %s1279_s27, %s1279_s27, %s1280_s28  }
  0x43   :  { %1267 = dma.done.wait [#allocation3], 128  }
  0x44   :  { %1268 = vsyncadd [#allocation3], 4294967168 }
  0x45   :  { %1269 = dma.done.wait [#allocation5], 4736  }
  0x46   :  { %1270 = vsyncadd [#allocation5], 4294962560 }
  0x47   :  { %1271 = dma.done.wait [#allocation8], 3072  }
  0x48   :  { %1272 = vsyncadd [#allocation8], 4294964224 }
  0x49   :  { %1273 = dma.done.wait [#allocation11], 1024  }
  0x4a   :  { %1274 = vsyncadd [#allocation11], 4294966272  ;;  %v1285_v0 = vmov 0   ;;  %v125_v1 = vld [vmem:[#allocation4 + $0x20] sm:$0xff]  ;;  %vm167_vm0 = vcmask 1043456   ;;  %v119_v13 = vld [vmem:[#allocation2] sm:$0xff]  ;;  %v128_v54 = vlaneseq }
  0x4b   :  { %206 = vmatprep.mubr.bf16.mxu0 %v1285_v0  ;;  %v896_v2 = vcombine.high %v125_v1, %v125_v1  ;;  %v895_v3 = vcombine.low %v125_v1, %v125_v1  ;;  %v1061_v4 = vld [vmem:[#allocation4 + $0x14] ss:$8 sps:$4 sm:$0xff]   ;;  %v1063_v6 = vld [vmem:[#allocation4 + $0x10] ss:$8 sps:$4 sm:$0xff]   ;;  %v1064_v9 = vld [vmem:[#allocation4 + $0x4] ss:$8 sps:$4 sm:$0xff]   ;;  %v120_v15 = vpack.c.bf16 %v119_v13, %v119_v13 }
  0x4c   :  { %v1067_v7 = vld [vmem:[#allocation6 + $0x74] ss:$8 sps:$4 sm:$0xff]   ;;  %v1069_v8 = vld [vmem:[#allocation6 + $0x70] ss:$8 sps:$4 sm:$0xff]   ;;  %v1070_v10 = vld [vmem:[#allocation6 + $0x64] ss:$8 sps:$4 sm:$0xff]  }
  0x4d   :  { %897 = vmatprep.subr.msk.bf16.mxu0 %vm167_vm0, %v896_v2  ;;  %v169_v5 = vsel %vm167_vm0, %v895_v3, 0  ;;  %v1066_v11 = vld [vmem:[#allocation4] ss:$8 sps:$4 sm:$0xff]   ;;  %427 = vmatprep.subr.bf16.mxu1 %v1067_v7  ;;  %v1073_v14 = vld [vmem:[#allocation6 + $0x54] ss:$8 sps:$4 sm:$0xff]   ;;  %vm163_vm1 = vcmask 326656  }
  0x4e   :  { %185 = vmatpush1.bf16.msra.mxu0 %v169_v5  ;;  %428 = vmatpush1.bf16.msra.mxu1 %v1069_v8  ;;  %v1072_v12 = vld [vmem:[#allocation6 + $0x60] ss:$8 sps:$4 sm:$0xff]   ;;  %v1075_v16 = vld [vmem:[#allocation6 + $0x50] ss:$8 sps:$4 sm:$0xff]   ;;  %v1076_v17 = vld [vmem:[#allocation6 + $0x44] ss:$8 sps:$4 sm:$0xff]  }
  0x4f   :  { %186 = vmatprep.subr.bf16.mxu0 %v1061_v4  ;;  %429 = vmatprep.subr.bf16.mxu1 %v1070_v10  ;;  %v1078_v18 = vld [vmem:[#allocation6 + $0x40] ss:$8 sps:$4 sm:$0xff]   ;;  %v1079_v19 = vld [vmem:[#allocation6 + $0x34] ss:$8 sps:$4 sm:$0xff]   ;;  %v1081_v20 = vld [vmem:[#allocation6 + $0x30] ss:$8 sps:$4 sm:$0xff]  }
  0x50   :  { %v1082_v21 = vld [vmem:[#allocation6 + $0x24] ss:$8 sps:$4 sm:$0xff]   ;;  %v1084_v22 = vld [vmem:[#allocation6 + $0x20] ss:$8 sps:$4 sm:$0xff]   ;;  %v1085_v23 = vld [vmem:[#allocation6 + $0x14] ss:$8 sps:$4 sm:$0xff]  }
  0x51   :  { %v1087_v24 = vld [vmem:[#allocation6 + $0x10] ss:$8 sps:$4 sm:$0xff]   ;;  %v1088_v25 = vld [vmem:[#allocation6 + $0x4] ss:$8 sps:$4 sm:$0xff]   ;;  %v1090_v26 = vld [vmem:[#allocation6] ss:$8 sps:$4 sm:$0xff]  }
  0x52   :  { %187 = vmatpush1.bf16.msra.mxu0 %v1063_v6  ;;  %430 = vmatpush1.bf16.msra.mxu1 %v1072_v12  ;;  %v1091_v27 = vld [vmem:[#allocation6 + $0xf4] ss:$8 sps:$4 sm:$0xff]   ;;  %v1093_v28 = vld [vmem:[#allocation6 + $0xf0] ss:$8 sps:$4 sm:$0xff]   ;;  %v1094_v29 = vld [vmem:[#allocation6 + $0xe4] ss:$8 sps:$4 sm:$0xff]  }
  0x53   :  { %188 = vmatprep.subr.bf16.mxu0 %v1064_v9  ;;  %431 = vmatprep.subr.bf16.mxu1 %v1073_v14  ;;  %v1096_v30 = vld [vmem:[#allocation6 + $0xe0] ss:$8 sps:$4 sm:$0xff]   ;;  %v1097_v31 = vld [vmem:[#allocation6 + $0xd4] ss:$8 sps:$4 sm:$0xff]   ;;  %v1099_v32 = vld [vmem:[#allocation6 + $0xd0] ss:$8 sps:$4 sm:$0xff]  }
  0x54   :  { %v1100_v33 = vld [vmem:[#allocation6 + $0xc4] ss:$8 sps:$4 sm:$0xff]   ;;  %v1102_v34 = vld [vmem:[#allocation6 + $0xc0] ss:$8 sps:$4 sm:$0xff]   ;;  %v1103_v35 = vld [vmem:[#allocation6 + $0xb4] ss:$8 sps:$4 sm:$0xff]  }
  0x55   :  { %v1105_v36 = vld [vmem:[#allocation6 + $0xb0] ss:$8 sps:$4 sm:$0xff]   ;;  %v1106_v37 = vld [vmem:[#allocation6 + $0xa4] ss:$8 sps:$4 sm:$0xff]   ;;  %v1108_v38 = vld [vmem:[#allocation6 + $0xa0] ss:$8 sps:$4 sm:$0xff]  }
  0x56   :  { %189 = vmatpush1.bf16.msra.mxu0 %v1066_v11  ;;  %432 = vmatpush1.bf16.msra.mxu1 %v1075_v16  ;;  %v1109_v39 = vld [vmem:[#allocation6 + $0x94] ss:$8 sps:$4 sm:$0xff]   ;;  %v1111_v40 = vld [vmem:[#allocation6 + $0x90] ss:$8 sps:$4 sm:$0xff]   ;;  %v1112_v41 = vld [vmem:[#allocation6 + $0x84] ss:$8 sps:$4 sm:$0xff]  }
  0x57   :  { %433 = vmatprep.subr.bf16.mxu1 %v1076_v17  ;;  %v1114_v42 = vld [vmem:[#allocation6 + $0x80] ss:$8 sps:$4 sm:$0xff]   ;;  %v1115_v43 = vld [vmem:[#allocation7 + $0x78] sm:$0xff]   ;;  %v1117_v45 = vld [vmem:[#allocation7 + $0x70] sm:$0xff]   ;;  %v129_v55 = vshrl.u32 %v128_v54, 7  ;;  %v1286_v14 = vmov 0.0  }
  0x58   :  { %v1116_v44 = vld [vmem:[#allocation7 + $0x38] sm:$0xff]   ;;  %966 = vmatprep.subr.bf16.mxu0 %v1115_v43  ;;  %v1118_v46 = vld [vmem:[#allocation7 + $0x30] sm:$0xff]   ;;  %v1119_v47 = vld [vmem:[#allocation7 + $0x68] sm:$0xff]   ;;  %vm1287_vm6 = vmmov 0  }
  0x59   :  { %898 = vmatmul.mubr.msk.bf16.vlgmr.msra.gmra.mxu0 %vm163_vm1, %v120_v15  ;;  %v1120_v48 = vld [vmem:[#allocation7 + $0x28] sm:$0xff]   ;;  %v1121_v49 = vld [vmem:[#allocation7 + $0x60] sm:$0xff]   ;;  %v1123_v51 = vld [vmem:[#allocation7 + $0x58] sm:$0xff]   ;;  %v130_v56 = vsub.s32 0, %v129_v55  ;;  %v134_v58 = vsub.s32 1, %v129_v55 }
  0x5a   :  { %434 = vmatpush1.bf16.msra.mxu1 %v1078_v18  ;;  %967 = vmatpush3.bf16.msra.mxu0 %v1116_v44  ;;  %v1122_v50 = vld [vmem:[#allocation7 + $0x20] sm:$0xff]   ;;  %v1124_v52 = vld [vmem:[#allocation7 + $0x18] sm:$0xff]   ;;  %v1125_v53 = vld [vmem:[#allocation7 + $0x50] sm:$0xff]  }
  0x5b   :  { %435 = vmatprep.subr.bf16.mxu1 %v1079_v19  ;;  %968 = vmatprep.subr.bf16.mxu0 %v1117_v45  ;;  %v126_v57 = vld [vmem:[%s1419_s2] sm:$0x3]  ;;  %v1127_v10 = vld [vmem:[#allocation7 + $0x48] sm:$0xff]   ;;  %v1129_v12 = vld [vmem:[#allocation7 + $0x40] sm:$0xff]  }
  0x5c   :  { %v131_v59 = vrot.slane %v126_v57, %v130_v56  ;;  %v135_v60 = vrot.slane %v126_v57, %v134_v58  ;;  %v1126_v9 = vld [vmem:[#allocation7 + $0x10] sm:$0xff]   ;;  %v1128_v11 = vld [vmem:[#allocation7 + $0x8] sm:$0xff]   ;;  %v1130_v13 = vld [vmem:[#allocation7] sm:$0xff]  }
  0x5d   :  { %v255_v15 = vld [vmem:[%s1421_s4] sm:$0x3]  ;;  %v1145_v54 = vld [vmem:[#allocation10 + $0x8] sm:$0xff]   ;;  %v1146_v55 = vld [vmem:[#allocation10] sm:$0xff]  }
  0x5e   :  { %436 = vmatpush1.bf16.msra.mxu1 %v1081_v20  ;;  %969 = vmatpush3.bf16.msra.mxu0 %v1118_v46  ;;  %v260_v16 = vrot.slane %v255_v15, %v130_v56  ;;  %v264_v17 = vrot.slane %v255_v15, %v134_v58  ;;  %v1144_v43 = vld [vmem:[#allocation10 + $0x10] sm:$0xff]  }
  0x5f   :  { %437 = vmatprep.subr.bf16.mxu1 %v1082_v21  ;;  %970 = vmatprep.subr.bf16.mxu0 %v1119_v47  ;;  %v931_v45 = vld [vmem:[%s1423_s6] ss:$0 sm:$0xff] }
  0x60   :  { %v948_v56 = vld [vmem:[%s1425_s8] ss:$0 sm:$0xff] }
  0x62   :  { %438 = vmatpush1.bf16.msra.mxu1 %v1084_v22  ;;  %971 = vmatpush3.bf16.msra.mxu0 %v1120_v48 }
  0x63   :  { %439 = vmatprep.subr.bf16.mxu1 %v1085_v23  ;;  %972 = vmatprep.subr.bf16.mxu0 %v1121_v49 }
  0x66   :  { %440 = vmatpush1.bf16.msra.mxu1 %v1087_v24  ;;  %973 = vmatpush3.bf16.msra.mxu0 %v1122_v50 }
  0x67   :  { %441 = vmatprep.subr.bf16.mxu1 %v1088_v25  ;;  %974 = vmatprep.subr.bf16.mxu0 %v1123_v51 }
  0x6a   :  { %442 = vmatpush1.bf16.msra.mxu1 %v1090_v26  ;;  %975 = vmatpush3.bf16.msra.mxu0 %v1124_v52 }
  0x6b   :  { %443 = vmatprep.subr.bf16.mxu1 %v1091_v27  ;;  %976 = vmatprep.subr.bf16.mxu0 %v1125_v53 }
  0x6e   :  { %444 = vmatpush2.bf16.msra.mxu1 %v1093_v28  ;;  %977 = vmatpush3.bf16.msra.mxu0 %v1126_v9 }
  0x6f   :  { %445 = vmatprep.subr.bf16.mxu1 %v1094_v29  ;;  %978 = vmatprep.subr.bf16.mxu0 %v1127_v10  ;;  %v1131_v29 = vld [vmem:[#allocation9 + $0x38] sm:$0xff]  }
  0x72   :  { %446 = vmatpush2.bf16.msra.mxu1 %v1096_v30  ;;  %979 = vmatpush3.bf16.msra.mxu0 %v1128_v11 }
  0x73   :  { %447 = vmatprep.subr.bf16.mxu1 %v1097_v31  ;;  %980 = vmatprep.subr.bf16.mxu0 %v1129_v12  ;;  %v1132_v31 = vld [vmem:[#allocation9 + $0x30] sm:$0xff]  }
  0x76   :  { %448 = vmatpush2.bf16.msra.mxu1 %v1099_v32  ;;  %981 = vmatpush3.bf16.msra.mxu0 %v1130_v13  ;;  %v1133_v32 = vld [vmem:[#allocation9 + $0x28] sm:$0xff]  }
  0x77   :  { %449 = vmatprep.subr.bf16.mxu1 %v1100_v33  ;;  %1006 = vmatprep.subr.bf16.mxu0 %v1286_v14  ;;  %v1134_v33 = vld [vmem:[#allocation9 + $0x20] sm:$0xff]  }
  0x7a   :  { %450 = vmatpush2.bf16.msra.mxu1 %v1102_v34  ;;  %v1135_v34 = vld [vmem:[#allocation9 + $0x18] sm:$0xff]  }
  0x7b   :  { %451 = vmatprep.subr.bf16.mxu1 %v1103_v35  ;;  %v1136_v35 = vld [vmem:[#allocation9 + $0x10] sm:$0xff]  }
  0x7e   :  { %452 = vmatpush2.bf16.msra.mxu1 %v1105_v36  ;;  %v1137_v36 = vld [vmem:[#allocation9 + $0x8] sm:$0xff]  }
  0x7f   :  { %453 = vmatprep.subr.bf16.mxu1 %v1106_v37  ;;  %v1138_v37 = vld [vmem:[#allocation9] sm:$0xff]  }
  0x82   :  { %454 = vmatpush2.bf16.msra.mxu1 %v1108_v38  ;;  %v1139_v38 = vld [vmem:[#allocation10 + $0x38] sm:$0xff]  }
  0x83   :  { %455 = vmatprep.subr.bf16.mxu1 %v1109_v39  ;;  %v1140_v39 = vld [vmem:[#allocation10 + $0x30] sm:$0xff]  }
  0x86   :  { %456 = vmatpush2.bf16.msra.mxu1 %v1111_v40  ;;  %v1141_v40 = vld [vmem:[#allocation10 + $0x28] sm:$0xff]  }
  0x87   :  { %457 = vmatprep.subr.bf16.mxu1 %v1112_v41  ;;  %v1142_v41 = vld [vmem:[#allocation10 + $0x20] sm:$0xff]  }
  0x8a   :  { %458 = vmatpush2.bf16.msra.mxu1 %v1114_v42  ;;  %v1143_v42 = vld [vmem:[#allocation10 + $0x18] sm:$0xff]  }
  0x8b   :  { %1026 = vmatprep.subr.bf16.mxu1 %v1286_v14 }
 0x119   :  { %v208_v61 = vpop.f32.mrf.mxu0 }
 0x11a   :  { %v209_v62 = vadd.f32 %v208_v61, %v131_v59 }
 0x11b   :  { %v210_v63 = vpop.f32.mrf.mxu0 }
 0x11c   :  { %vm215_vm2 = vcmp.gt.f32.partialorder %v209_v62, 0.0  ;;  %v217_v0 = vmul.f32 0.01, %v209_v62  ;;  %v211_v1 = vadd.f32 %v210_v63, %v135_v60 }
 0x11d   :  { %v212_v2 = vpop.f32.mrf.mxu0 }
 0x11e   :  { %vm216_vm3 = vcmp.gt.f32.partialorder %v211_v1, 0.0  ;;  %v218_v3 = vmul.f32 0.01, %v211_v1  ;;  %v219_v5 = vsel %vm215_vm2, %v209_v62, %v217_v0 }
 0x11f   :  { %v213_v4 = vpop.f32.mrf.mxu0  ;;  %v221_v8 = vpack.c.bf16 %v219_v5, %v219_v5 }
 0x120   :  { %v220_v6 = vsel %vm216_vm3, %v211_v1, %v218_v3  ;;  %v957_v1 = vld [vmem:[%s1427_s10] ss:$0 sm:$0xff] }
 0x121   :  { %v222_v7 = vpack.c.bf16 %v220_v6, %v220_v6 }
 0x123   :  { %459 = vmatprep.mubr.bf16.mxu1 %v222_v7 }
 0x124   :  { %460 = vmatmul.mubr.bf16.vlgmr.msra.gmra.mxu1 %v221_v8 }
 0x125   :  { %1042 = vmatprep.mubr.msk.bf16.mxu1 %vm1287_vm6, %v1286_v14  ;;  %1027 = vmatpush3.bf16.msra.mxu1 %v1139_v38 }
 0x126   :  { %1028 = vmatprep.subr.bf16.mxu1 %v1286_v14 }
 0x129   :  { %1029 = vmatpush3.bf16.msra.mxu1 %v1140_v39 }
 0x12a   :  { %1030 = vmatprep.subr.bf16.mxu1 %v1286_v14 }
 0x12d   :  { %1031 = vmatpush3.bf16.msra.mxu1 %v1141_v40 }
 0x12e   :  { %1032 = vmatprep.subr.bf16.mxu1 %v1286_v14 }
 0x131   :  { %1033 = vmatpush3.bf16.msra.mxu1 %v1142_v41 }
 0x132   :  { %1034 = vmatprep.subr.bf16.mxu1 %v1286_v14 }
 0x135   :  { %1035 = vmatpush3.bf16.msra.mxu1 %v1143_v42 }
 0x136   :  { %1036 = vmatprep.subr.bf16.mxu1 %v1286_v14 }
 0x139   :  { %1037 = vmatpush3.bf16.msra.mxu1 %v1144_v43 }
 0x13a   :  { %1038 = vmatprep.subr.bf16.mxu1 %v1286_v14 }
 0x13d   :  { %1039 = vmatpush3.bf16.msra.mxu1 %v1145_v54 }
 0x13e   :  { %1040 = vmatprep.subr.bf16.mxu1 %v1286_v14 }
 0x141   :  { %1041 = vmatpush3.bf16.msra.mxu1 %v1146_v55 }
 0x1e4   :  { %v461_v18 = vpop.f32.mrf.mxu1 }
 0x1e5   :  { %v462_v19 = vadd.f32 %v461_v18, %v260_v16 }
 0x1e6   :  { %v463_v20 = vpop.f32.mrf.mxu1 }
 0x1e7   :  { %vm468_vm4 = vcmp.gt.f32.partialorder %v462_v19, 0.0  ;;  %v470_v21 = vmul.f32 0.01, %v462_v19  ;;  %v464_v22 = vadd.f32 %v463_v20, %v264_v17 }
 0x1e8   :  { %v465_v23 = vpop.f32.mrf.mxu1 }
 0x1e9   :  { %vm469_vm5 = vcmp.gt.f32.partialorder %v464_v22, 0.0  ;;  %v471_v24 = vmul.f32 0.01, %v464_v22  ;;  %v472_v25 = vsel %vm468_vm4, %v462_v19, %v470_v21 }
 0x1ea   :  { %v466_v26 = vpop.f32.mrf.mxu1  ;;  %v474_v30 = vpack.c.bf16 %v472_v25, %v472_v25 }
 0x1eb   :  { %v473_v27 = vsel %vm469_vm5, %v464_v22, %v471_v24 }
 0x1ec   :  { %v475_v28 = vpack.c.bf16 %v473_v27, %v473_v27 }
 0x1ee   :  { %643 = vmatprep.mubr.bf16.mxu0 %v475_v28 }
 0x1ef   :  { %644 = vmatmul.mubr.bf16.vlgmr.msra.gmra.mxu0 %v474_v30 }
 0x1f0   :  { %1007 = vmatpush3.bf16.msra.mxu0 %v1131_v29  ;;  %1022 = vmatprep.mubr.msk.bf16.mxu0 %vm1287_vm6, %v1286_v14 }
 0x1f1   :  { %1008 = vmatprep.subr.bf16.mxu0 %v1286_v14 }
 0x1f4   :  { %1009 = vmatpush3.bf16.msra.mxu0 %v1132_v31 }
 0x1f5   :  { %1010 = vmatprep.subr.bf16.mxu0 %v1286_v14 }
 0x1f8   :  { %1011 = vmatpush3.bf16.msra.mxu0 %v1133_v32 }
 0x1f9   :  { %1012 = vmatprep.subr.bf16.mxu0 %v1286_v14 }
 0x1fc   :  { %1013 = vmatpush3.bf16.msra.mxu0 %v1134_v33 }
 0x1fd   :  { %1014 = vmatprep.subr.bf16.mxu0 %v1286_v14 }
 0x200   :  { %1015 = vmatpush3.bf16.msra.mxu0 %v1135_v34 }
 0x201   :  { %1016 = vmatprep.subr.bf16.mxu0 %v1286_v14 }
 0x204   :  { %1017 = vmatpush3.bf16.msra.mxu0 %v1136_v35 }
 0x205   :  { %1018 = vmatprep.subr.bf16.mxu0 %v1286_v14 }
 0x208   :  { %1019 = vmatpush3.bf16.msra.mxu0 %v1137_v36 }
 0x209   :  { %1020 = vmatprep.subr.bf16.mxu0 %v1286_v14 }
 0x20c   :  { %1021 = vmatpush3.bf16.msra.mxu0 %v1138_v37 }
 0x2af   :  { %v982_v44 = vpop.f32.mrf.mxu0 }
 0x2b1   :  { %v983_v46 = vpop.f32.mrf.mxu0 }
 0x2b2   :  { %v984_v47 = vadd.f32 %v983_v46, %v982_v44 }
 0x2b3   :  { %v985_v48 = vpop.f32.mrf.mxu0 }
 0x2b4   :  { %v646_v49 = vadd.f32 %v984_v47, %v931_v45 }
 0x2b5   :  { %v986_v50 = vpop.f32.mrf.mxu0 }
 0x2b6   :  { %vm651_vm7 = vcmp.gt.f32.partialorder %v646_v49, 0.0  ;;  %v652_v51 = vmul.f32 0.01, %v646_v49 }
 0x2b8   :  { %v653_v52 = vsel %vm651_vm7, %v646_v49, %v652_v51 }
 0x2b9   :  { %v654_v53 = vpack.c.bf16 %v653_v52, %v653_v52 }
 0x2bb   :  { %1023 = vmatmul.mubr.bf16.vlgmr.msra.gmra.mxu0 %v654_v53 }
 0x37b   :  { %v760_v57 = vpop.f32.mrf.mxu0 }
 0x37c   :  { %v761_v58 = vadd.f32 %v948_v56, %v760_v57 }
 0x37d   :  { %v1024_v59 = vpop.f32.mrf.mxu0 }
 0x37e   :  { %vm766_vm8 = vcmp.gt.f32.partialorder %v761_v58, 0.0  ;;  %v767_v60 = vmul.f32 0.01, %v761_v58 }
 0x37f   :  { %v763_v61 = vpop.f32.mrf.mxu0 }
 0x380   :  { %v768_v62 = vsel %vm766_vm8, %v761_v58, %v767_v60 }
 0x381   :  { %v769_v63 = vpack.c.bf16 %v768_v62, %v768_v62  ;;  %v1025_v0 = vpop.f32.mrf.mxu0 }
 0x383   :  { %1043 = vmatmul.mubr.bf16.vlgmr.msra.gmra.mxu1 %v769_v63 }
 0x443   :  { %v875_v2 = vpop.f32.mrf.mxu1 }
 0x444   :  { %v876_v3 = vadd.f32 %v957_v1, %v875_v2 }
 0x445   :  { %v1044_v4 = vpop.f32.mrf.mxu1 }
 0x446   :  { %v881_v5 = vpack.c.bf16 %v876_v3, %v876_v3 }
 0x447   :  { %v878_v6 = vpop.f32.mrf.mxu1 }
 0x448   :  { %882 = vst [vmem:[%s1428_s11] sm:$0xf] %v881_v5 }
 0x449   :  { %v1045_v7 = vpop.f32.mrf.mxu1 }
 0x44a   :  { %887 = vsyncpa [#allocation3], 1 }
 0x44b   :  { %888 = vsyncpa [#allocation5], 1 }
 0x44c   :  { %889 = vsyncpa [#allocation8], 1 }
 0x44d   :  { %890 = vsyncpa [#allocation11], 1 }

</bundles_post_ra>
